<compile_context>
chip_gen: v7x
topology: tpu7x:2x2x1
jax: 0.10.0
libtpu: 0.0.40
codegen_flags: <defaults>
</compile_context>

<pallas_src>
import functools

import jax
import jax.numpy as jnp
from jax.experimental import pallas as pl
from jax.experimental.pallas import tpu as pltpu


def _round_up(x, m):
    return ((x + m - 1) // m) * m


def _pick_tile(dim, desired, mult=128):
    """Largest tile t <= max(desired, mult) that is a multiple of `mult` and
    divides round_up(dim, mult), so no extra padding of that axis is needed."""
    dp = _round_up(max(dim, 1), mult)
    q = dp // mult
    cap = max(desired // mult, 1)
    best = 1
    for d in range(1, q + 1):
        if q % d == 0 and d <= cap:
            best = d
    return best * mult


def _two_tensorcores():
    """v4 / v7x expose two TensorCores per device; everything else has one."""
    try:
        kind = jax.devices()[0].device_kind.lower()
    except Exception:
        return False
    return ("v4" in kind) or ("v7" in kind) or ("tpu7" in kind)


def _grouped_gemm_kernel(
    w_tile_ref, w_expert_ref, w_rs_ref, w_re_ref,   # scalar prefetch (SMEM)
    a_ref, b_ref,                                   # VMEM inputs
    o_ref,                                          # VMEM output
    acc_ref,                                        # VMEM scratch (tm, tn) f32
    *, b_is_nk,
):
    """One (n-tile, work-item, k-tile) grid step."""
    del w_expert_ref  # only used inside the b index_map
    w = pl.program_id(1)
    k = pl.program_id(2)
    num_w = pl.num_programs(1)
    num_k = pl.num_programs(2)
    tm = acc_ref.shape[0]

    tile = w_tile_ref[w]
    row_s = w_rs_ref[w]
    row_e = w_re_ref[w]

    prev_tile = w_tile_ref[jnp.maximum(w - 1, 0)]
    next_tile = w_tile_ref[jnp.minimum(w + 1, num_w - 1)]
    first_visit = jnp.logical_or(w == 0, prev_tile != tile)
    last_visit = jnp.logical_or(w == num_w - 1, next_tile != tile)

    @pl.when(jnp.logical_and(k == 0, first_visit))
    def _init():
        acc_ref[...] = jnp.zeros_like(acc_ref)

    # Dummy / padding work items do no MXU work (and, thanks to the clamped
    # index maps, essentially no DMA either).
    @pl.when(row_e > row_s)
    def _compute():
        if b_is_nk:
            # b block is (tn, tk): column-major weight, contract K (dim 1 of both).
            dims = (((1,), (1,)), ((), ()))
        else:
            # b block is (tk, tn): contract a's K with b's dim 0.
            dims = (((1,), (0,)), ((), ()))
        prod = jax.lax.dot_general(
            a_ref[...], b_ref[...],
            dimension_numbers=dims,
            preferred_element_type=jnp.float32,
        )  # (tm, tn)

        tile_base = tile * tm
        full = jnp.logical_and(row_s <= tile_base, row_e >= tile_base + tm)

        @pl.when(full)
        def _full_tile():
            acc_ref[...] += prod

        @pl.when(jnp.logical_not(full))
        def _boundary_tile():
            row = tile_base + jax.lax.broadcasted_iota(jnp.int32, (tm, 1), 0)
            mask = jnp.logical_and(row >= row_s, row < row_e)
            acc_ref[...] += jnp.where(mask, prod, 0.0)

    @pl.when(jnp.logical_and(k == num_k - 1, last_visit))
    def _finalize():
        o_ref[...] = acc_ref[...].astype(o_ref.dtype)


def grouped_gemm(a, b, seg_indptr, *, weight_column_major=True,
                 weight_indices=None, tm=512, tn=512, tk=1024, out_dtype=None):
    """a: (M, K), b: (E, N, K) if column-major else (E, K, N),
    seg_indptr: (G+1,) sorted, non-overlapping int offsets. Returns (M, N)."""
    M, K = a.shape
    if weight_column_major:
        E, N, Kb = b.shape
    else:
        E, Kb, N = b.shape
    assert Kb == K
    G = seg_indptr.shape[0] - 1
    out_dtype = a.dtype if out_dtype is None else out_dtype

    a_item = jnp.dtype(a.dtype).itemsize
    b_item = jnp.dtype(b.dtype).itemsize
    o_item = jnp.dtype(out_dtype).itemsize

    # tm: round to the dtype sublane pack (8 f32 / 16 bf16 / 32 int8-fp8).
    pack = max(8, 32 // a_item)
    tm = _round_up(max(pack, min(tm, _round_up(M, pack))), pack)

    # tn / tk: biggest 128-multiple <= desired that divides the 128-rounded
    # axis -> no wrapper-side jnp.pad of the whole weight tensor for the usual
    # MoE shapes (N, K multiples of 128).
    tn = _pick_tile(N, tn)
    tk = _pick_tile(K, tk)

    Np = _round_up(N, 128)
    Kp = _round_up(K, 128)

    # Megacore: grid axis 0 (Np // tn) is the only "parallel" axis; on 2-TC
    # chips (v4 / v7x) make sure it has at least 2 iterations.
    if Np // tn < 2 and Np >= 256 and Np % 256 == 0 and _two_tensorcores():
        tn = Np // 2

    Mp = _round_up(M, tm)

    if (Mp, Kp) != (M, K):
        a = jnp.pad(a, ((0, Mp - M), (0, Kp - K)))
    if weight_column_major:
        if (Np, Kp) != (N, K):   # only when N or K are not multiples of 128
            b = jnp.pad(b, ((0, 0), (0, Np - N), (0, Kp - K)))
    else:
        if (Np, Kp) != (N, K):
            b = jnp.pad(b, ((0, 0), (0, Kp - K), (0, Np - N)))

    seg = jnp.clip(seg_indptr.astype(jnp.int32), 0, M)

    # ---- Routing metadata (requires sorted, non-overlapping seg_indptr). ----
    T = Mp // tm
    W = T + G                       # static upper bound on work items
    tile_lo = jnp.arange(T, dtype=jnp.int32) * tm          # (T,)
    tile_hi = tile_lo + tm
    inter_lo = jnp.maximum(tile_lo[:, None], seg[:-1][None, :])   # (T, G)
    inter_hi = jnp.minimum(tile_hi[:, None], seg[1:][None, :])
    has = inter_hi > inter_lo                                     # (T, G)
    covered = jnp.any(has, axis=1)
    # Uncovered tiles get one dummy visit (group 0, empty range) so they are
    # zero-initialized and written exactly once.
    has = has.at[:, 0].set(jnp.logical_or(has[:, 0], jnp.logical_not(covered)))

    flat_has = has.reshape(-1)                                    # tile-major
    num_valid = jnp.sum(flat_has.astype(jnp.int32))
    idx = jnp.nonzero(flat_has, size=W, fill_value=0)[0].astype(jnp.int32)
    last_idx = idx[jnp.maximum(num_valid - 1, 0)]
    pos = jnp.arange(W, dtype=jnp.int32)
    idx = jnp.where(pos < num_valid, idx, last_idx)               # sticky padding

    w_tile = (idx // G).astype(jnp.int32)
    w_group = (idx % G).astype(jnp.int32)
    w_rs = inter_lo.reshape(-1)[idx].astype(jnp.int32)
    w_re = inter_hi.reshape(-1)[idx].astype(jnp.int32)
    w_re = jnp.where(pos < num_valid, w_re, w_rs)   # padding  -> empty range
    w_re = jnp.maximum(w_re, w_rs)                  # dummies  -> empty range

    if weight_indices is not None:
        w_expert = weight_indices.astype(jnp.int32)[w_group]
    else:
        w_expert = w_group

    num_k = Kp // tk
    nk1 = num_k - 1
    grid = (Np // tn, W, num_k)

    # Empty work items (dummy uncovered-tile visits + sticky padding) do no
    # compute; clamp their k block index to the LAST k so the a / b blocks of
    # the previous grid step are reused and no fresh DMA is issued for them.
    def _a_map(n, w, k, wt, we, rs, re):
        return (wt[w], jnp.where(re[w] > rs[w], k, nk1))

    if weight_column_major:
        def _b_map(n, w, k, wt, we, rs, re):
            return (we[w], n, jnp.where(re[w] > rs[w], k, nk1))
        b_spec = pl.BlockSpec((pl.Squeezed(), tn, tk), _b_map)
    else:
        def _b_map(n, w, k, wt, we, rs, re):
            return (we[w], jnp.where(re[w] > rs[w], k, nk1), n)
        b_spec = pl.BlockSpec((pl.Squeezed(), tk, tn), _b_map)

    kernel = functools.partial(_grouped_gemm_kernel, b_is_nk=weight_column_major)

    # Realistic traffic: A is re-read once per n-tile; each expert weight slab
    # is read roughly once per covered token tile (per n-tile of its columns).
    cost = pl.CostEstimate(
        flops=2 * M * N * K,
        transcendentals=0,
        bytes_accessed=int(Mp * Kp * a_item * (Np // tn)
                           + Np * Kp * b_item * (Mp // tm + G)
                           + Mp * Np * o_item),
    )

    # VMEM footprint: double-buffered a/b/out tiles + f32 accumulator.
    footprint = (2 * (tm * tk * a_item + tn * tk * b_item + tm * tn * o_item)
                 + tm * tn * 4)
    vmem_limit = int(min(max(32 << 20, footprint * 3 // 2 + (2 << 20)), 48 << 20))

    out = pl.pallas_call(
        kernel,
        out_shape=jax.ShapeDtypeStruct((Mp, Np), out_dtype),
        grid_spec=pltpu.PrefetchScalarGridSpec(
            num_scalar_prefetch=4,
            grid=grid,
            in_specs=[
                pl.BlockSpec((tm, tk), _a_map),
                b_spec,
            ],
            out_specs=pl.BlockSpec((tm, tn),
                                   lambda n, w, k, wt, we, rs, re: (wt[w], n)),
            scratch_shapes=[pltpu.VMEM((tm, tn), jnp.float32)],
        ),
        compiler_params=pltpu.CompilerParams(
            dimension_semantics=("parallel", "arbitrary", "arbitrary"),
            vmem_limit_bytes=vmem_limit),
        cost_estimate=cost,
    )(w_tile, w_expert, w_rs, w_re, a, b)

    if (Mp, Np) != (M, N):
        out = out[:M, :N]
    return out


def grouped_gemm_runner_forward(
    a,
    b,
    c,  # pre-allocated output (shape/dtype reference only; a fresh array is returned)
    batch_size,
    weight_column_major,
    seg_indptr=None,
    weight_indices=None,
    use_fp8_w8a8=False,
    scale_a=None,
    scale_b=None,
    block_shape=None,
):
    """Mirrors GroupedGemmRunner.forward (the supported path)."""
    del batch_size, scale_a, scale_b
    # TODO(synk): fp8 w8a8 with per-block scales (use_fp8_w8a8 / block_shape);
    #             needs per-generation quant paths (v7x: fp8 MXU, v5e/v6e: int8).
    assert not use_fp8_w8a8 and block_shape is None, "fp8 path not implemented"
    out_dtype = c.dtype if c is not None else a.dtype
    return grouped_gemm(a, b, seg_indptr,
                        weight_column_major=weight_column_major,
                        weight_indices=weight_indices,
                        out_dtype=out_dtype)


def _reference(a, b, seg_indptr, weight_column_major=True):
    M = a.shape[0]
    if weight_column_major:
        E, N, _ = b.shape
    else:
        E, _, N = b.shape
    out = jnp.zeros((M, N), jnp.float32)
    for e in range(E):
        s = int(seg_indptr[e])
        t = int(seg_indptr[e + 1])
        if t > s:
            w = b[e].T if weight_column_major else b[e]
            out = out.at[s:t].set(a[s:t].astype(jnp.float32) @ w.astype(jnp.float32))
    return out


if __name__ == "__main__":
    key = jax.random.PRNGKey(0)
    k_a, k_b = jax.random.split(key)

    M, K, N, E = 128, 128, 256, 4            # small synthetic MoE shapes
    a = jax.random.normal(k_a, (M, K), dtype=jnp.float32)
    b = jax.random.normal(k_b, (E, N, K), dtype=jnp.float32)   # column-major (N, K)
    c = jnp.zeros((M, N), dtype=jnp.float32)
    # Ragged, tile-unaligned segments; rows 96..127 belong to no expert -> zero.
    seg_indptr = jnp.array([0, 10, 37, 70, 96], dtype=jnp.int32)

    ref = _reference(a, b, seg_indptr, weight_column_major=True)

    # Small explicit tiles: exercises multi-tile routing, boundary masking,
    # a fully-uncovered tile (dummy work item) and sticky padding.
    out_small = jax.block_until_ready(
        grouped_gemm(a, b, seg_indptr, weight_column_major=True,
                     tm=32, tn=128, tk=128))
    assert out_small.shape == (M, N)
    assert jnp.allclose(out_small, ref, atol=1e-3, rtol=1e-3), "mismatch (small tiles)"

    # Default (performance) tile sizes via the runner entry point.
    out_def = jax.block_until_ready(
        grouped_gemm_runner_forward(a, b, c, batch_size=E,
                                    weight_column_major=True,
                                    seg_indptr=seg_indptr))
    assert out_def.shape == (M, N)
    assert jnp.allclose(out_def, ref, atol=1e-3, rtol=1e-3), "mismatch (default tiles)"

    # Row-major weights + explicit weight_indices remap.
    b_rm = jnp.transpose(b, (0, 2, 1))                 # (E, K, N)
    widx = jnp.arange(E, dtype=jnp.int32)
    out_rm = jax.block_until_ready(
        grouped_gemm(a, b_rm, seg_indptr, weight_column_major=False,
                     weight_indices=widx))
    assert jnp.allclose(out_rm, ref, atol=1e-3, rtol=1e-3), "mismatch (row-major)"

    print("KERNEL_OK")
</pallas_src>

<mosaic_0001>
module attributes {stable_mosaic.version = 11 : i64} {
  func.func @_grouped_gemm_kernel(%arg0: i32, %arg1: i32, %arg2: i32, %arg3: memref<8xi32, #tpu.memory_space<smem>>, %arg4: memref<8xi32, #tpu.memory_space<smem>>, %arg5: memref<8xi32, #tpu.memory_space<smem>>, %arg6: memref<8xi32, #tpu.memory_space<smem>>, %arg7: memref<32x128xf32, #tpu.memory_space<vmem>>, %arg8: memref<1x128x128xf32, #tpu.memory_space<vmem>>, %arg9: memref<32x128xf32, #tpu.memory_space<vmem>>, %arg10: memref<32x128xf32, #tpu.memory_space<vmem>>) attributes {dimension_semantics = [#tpu.dimension_semantics<parallel>, #tpu.dimension_semantics<arbitrary>, #tpu.dimension_semantics<arbitrary>], iteration_bounds = array<i64: 2, 8, 1>, scalar_prefetch = 4 : i64, scratch_operands = 1 : i64, tpu.core_type = #tpu.core_type<tc>, window_params = [{transform_indices = @transform_0, window_bounds = array<i64: 32, 128>}, {transform_indices = @transform_1, window_bounds = array<i64: 1, 128, 128>}, {transform_indices = @transform_2, window_bounds = array<i64: 32, 128>}]} {
    %0 = arith.index_cast %arg1 : i32 to index
    %1 = memref.load %arg3[%0] : memref<8xi32, #tpu.memory_space<smem>>
    %2 = arith.index_cast %arg1 : i32 to index
    %3 = memref.load %arg5[%2] : memref<8xi32, #tpu.memory_space<smem>>
    %4 = arith.index_cast %arg1 : i32 to index
    %5 = memref.load %arg6[%4] : memref<8xi32, #tpu.memory_space<smem>>
    %c1_i32 = arith.constant 1 : i32
    %6 = arith.subi %arg1, %c1_i32 : i32
    %c0_i32 = arith.constant 0 : i32
    %7 = arith.maxsi %6, %c0_i32 : i32
    %8 = arith.index_cast %7 : i32 to index
    %9 = memref.load %arg3[%8] : memref<8xi32, #tpu.memory_space<smem>>
    %c1_i32_0 = arith.constant 1 : i32
    %10 = arith.addi %arg1, %c1_i32_0 : i32
    %c7_i32 = arith.constant 7 : i32
    %11 = arith.minsi %10, %c7_i32 : i32
    %12 = arith.index_cast %11 : i32 to index
    %13 = memref.load %arg3[%12] : memref<8xi32, #tpu.memory_space<smem>>
    %c0_i32_1 = arith.constant 0 : i32
    %14 = arith.cmpi eq, %arg1, %c0_i32_1 : i32
    %15 = arith.cmpi ne, %9, %1 : i32
    %16 = arith.ori %14, %15 : i1
    %c7_i32_2 = arith.constant 7 : i32
    %17 = arith.cmpi eq, %arg1, %c7_i32_2 : i32
    %18 = arith.cmpi ne, %13, %1 : i32
    %19 = arith.ori %17, %18 : i1
    %c0_i32_3 = arith.constant 0 : i32
    %20 = arith.cmpi eq, %arg2, %c0_i32_3 : i32
    %21 = arith.andi %20, %16 : i1
    %22 = arith.extui %21 : i1 to i32
    %c0_i32_4 = arith.constant 0 : i32
    %23 = arith.cmpi ne, %22, %c0_i32_4 : i32
    scf.if %23 {
      %cst = arith.constant 0.000000e+00 : f32
      %31 = vector.broadcast %cst : f32 to vector<32x128xf32>
      %c0 = arith.constant 0 : index
      %c0_8 = arith.constant 0 : index
      %32 = vector.load %arg10[%c0, %c0_8] : memref<32x128xf32, #tpu.memory_space<vmem>>, vector<32x128xf32>
      tpu.vector_store %arg10[%c0, %c0_8], %31 {strides = array<i32>} : memref<32x128xf32, #tpu.memory_space<vmem>>, vector<32x128xf32>,
    } else {
    }
    %24 = arith.cmpi sgt, %5, %3 : i32
    %25 = arith.extui %24 : i1 to i32
    %c0_i32_5 = arith.constant 0 : i32
    %26 = arith.cmpi ne, %25, %c0_i32_5 : i32
    scf.if %26 {
      %c0 = arith.constant 0 : index
      %c0_8 = arith.constant 0 : index
      %31 = vector.load %arg7[%c0, %c0_8] : memref<32x128xf32, #tpu.memory_space<vmem>>, vector<32x128xf32>
      %c0_9 = arith.constant 0 : index
      %c0_10 = arith.constant 0 : index
      %c0_11 = arith.constant 0 : index
      %32 = vector.load %arg8[%c0_9, %c0_10, %c0_11] : memref<1x128x128xf32, #tpu.memory_space<vmem>>, vector<1x128x128xf32>
      %33 = vector.shape_cast %32 : vector<1x128x128xf32> to vector<128x128xf32>
      %cst = arith.constant dense<0.000000e+00> : vector<32x128xf32>
      %34 = tpu.matmul %31, %33, %cst {dimension_numbers = #tpu.dot_dimension_numbers<[1], [1], [0], [0], [0, 0, 1, 0], [], []>} : vector<32x128xf32>, vector<128x128xf32>, vector<32x128xf32> -> vector<32x128xf32>
      %c32_i32 = arith.constant 32 : i32
      %35 = arith.muli %1, %c32_i32 : i32
      %36 = arith.cmpi sle, %3, %35 : i32
      %c32_i32_12 = arith.constant 32 : i32
      %37 = arith.addi %35, %c32_i32_12 : i32
      %38 = arith.cmpi sge, %5, %37 : i32
      %39 = arith.andi %36, %38 : i1
      %40 = arith.extui %39 : i1 to i32
      %c0_i32_13 = arith.constant 0 : i32
      %41 = arith.cmpi ne, %40, %c0_i32_13 : i32
      scf.if %41 {
        %c0_15 = arith.constant 0 : index
        %c0_16 = arith.constant 0 : index
        %45 = vector.load %arg10[%c0_15, %c0_16] : memref<32x128xf32, #tpu.memory_space<vmem>>, vector<32x128xf32>
        %46 = arith.addf %45, %34 : vector<32x128xf32>
        %c0_17 = arith.constant 0 : index
        %c0_18 = arith.constant 0 : index
        %47 = vector.load %arg10[%c0_17, %c0_18] : memref<32x128xf32, #tpu.memory_space<vmem>>, vector<32x128xf32>
        tpu.vector_store %arg10[%c0_17, %c0_18], %46 {strides = array<i32>} : memref<32x128xf32, #tpu.memory_space<vmem>>, vector<32x128xf32>,
      } else {
      }
      %true = arith.constant true
      %42 = arith.xori %39, %true : i1
      %43 = arith.extui %42 : i1 to i32
      %c0_i32_14 = arith.constant 0 : i32
      %44 = arith.cmpi ne, %43, %c0_i32_14 : i32
      scf.if %44 {
        %45 = tpu.iota {dimensions = array<i32: 0>} : vector<32x1xi32>
        %46 = vector.broadcast %35 : i32 to vector<32x1xi32>
        %47 = arith.addi %46, %45 : vector<32x1xi32>
        %48 = vector.broadcast %3 : i32 to vector<32x1xi32>
        %49 = arith.cmpi sge, %47, %48 : vector<32x1xi32>
        %50 = vector.broadcast %5 : i32 to vector<32x1xi32>
        %51 = arith.cmpi slt, %47, %50 : vector<32x1xi32>
        %52 = arith.andi %49, %51 : vector<32x1xi1>
        %c0_15 = arith.constant 0 : index
        %c0_16 = arith.constant 0 : index
        %53 = vector.load %arg10[%c0_15, %c0_16] : memref<32x128xf32, #tpu.memory_space<vmem>>, vector<32x128xf32>
        %cst_17 = arith.constant 0.000000e+00 : f32
        %54 = vector.shape_cast %52 : vector<32x1xi1> to vector<32x1xi1>
        %55 = vector.broadcast %54 : vector<32x1xi1> to vector<32x128xi1>
        %56 = vector.broadcast %cst_17 : f32 to vector<32x128xf32>
        %57 = arith.select %55, %34, %56 : vector<32x128xi1>, vector<32x128xf32>
        %58 = arith.addf %53, %57 : vector<32x128xf32>
        %c0_18 = arith.constant 0 : index
        %c0_19 = arith.constant 0 : index
        %59 = vector.load %arg10[%c0_18, %c0_19] : memref<32x128xf32, #tpu.memory_space<vmem>>, vector<32x128xf32>
        tpu.vector_store %arg10[%c0_18, %c0_19], %58 {strides = array<i32>} : memref<32x128xf32, #tpu.memory_space<vmem>>, vector<32x128xf32>,
      } else {
      }
    } else {
    }
    %c0_i32_6 = arith.constant 0 : i32
    %27 = arith.cmpi eq, %arg2, %c0_i32_6 : i32
    %28 = arith.andi %27, %19 : i1
    %29 = arith.extui %28 : i1 to i32
    %c0_i32_7 = arith.constant 0 : i32
    %30 = arith.cmpi ne, %29, %c0_i32_7 : i32
    scf.if %30 {
      %c0 = arith.constant 0 : index
      %c0_8 = arith.constant 0 : index
      %31 = vector.load %arg10[%c0, %c0_8] : memref<32x128xf32, #tpu.memory_space<vmem>>, vector<32x128xf32>
      %c0_9 = arith.constant 0 : index
      %c0_10 = arith.constant 0 : index
      %32 = vector.load %arg9[%c0_9, %c0_10] : memref<32x128xf32, #tpu.memory_space<vmem>>, vector<32x128xf32>
      tpu.vector_store %arg9[%c0_9, %c0_10], %31 {strides = array<i32>} : memref<32x128xf32, #tpu.memory_space<vmem>>, vector<32x128xf32>,
    } else {
    }
    return
  }
  func.func @transform_0(%arg0: i32, %arg1: i32, %arg2: i32, %arg3: memref<8xi32, #tpu.memory_space<smem>>, %arg4: memref<8xi32, #tpu.memory_space<smem>>, %arg5: memref<8xi32, #tpu.memory_space<smem>>, %arg6: memref<8xi32, #tpu.memory_space<smem>>) -> (i32, i32) {
    %0 = arith.index_cast %arg1 : i32 to index
    %1 = memref.load %arg3[%0] : memref<8xi32, #tpu.memory_space<smem>>
    %2 = arith.index_cast %arg1 : i32 to index
    %3 = memref.load %arg6[%2] : memref<8xi32, #tpu.memory_space<smem>>
    %4 = arith.index_cast %arg1 : i32 to index
    %5 = memref.load %arg5[%4] : memref<8xi32, #tpu.memory_space<smem>>
    %6 = arith.cmpi sgt, %3, %5 : i32
    %c0_i32 = arith.constant 0 : i32
    %7 = arith.select %6, %arg2, %c0_i32 : i32
    %c0_i32_0 = arith.constant 0 : i32
    return %1, %7 : i32, i32
  }
  func.func @transform_1(%arg0: i32, %arg1: i32, %arg2: i32, %arg3: memref<8xi32, #tpu.memory_space<smem>>, %arg4: memref<8xi32, #tpu.memory_space<smem>>, %arg5: memref<8xi32, #tpu.memory_space<smem>>, %arg6: memref<8xi32, #tpu.memory_space<smem>>) -> (i32, i32, i32) {
    %0 = arith.index_cast %arg1 : i32 to index
    %1 = memref.load %arg4[%0] : memref<8xi32, #tpu.memory_space<smem>>
    %2 = arith.index_cast %arg1 : i32 to index
    %3 = memref.load %arg6[%2] : memref<8xi32, #tpu.memory_space<smem>>
    %4 = arith.index_cast %arg1 : i32 to index
    %5 = memref.load %arg5[%4] : memref<8xi32, #tpu.memory_space<smem>>
    %6 = arith.cmpi sgt, %3, %5 : i32
    %c0_i32 = arith.constant 0 : i32
    %7 = arith.select %6, %arg2, %c0_i32 : i32
    %c0_i32_0 = arith.constant 0 : i32
    return %1, %arg0, %7 : i32, i32, i32
  }
  func.func @transform_2(%arg0: i32, %arg1: i32, %arg2: i32, %arg3: memref<8xi32, #tpu.memory_space<smem>>, %arg4: memref<8xi32, #tpu.memory_space<smem>>, %arg5: memref<8xi32, #tpu.memory_space<smem>>, %arg6: memref<8xi32, #tpu.memory_space<smem>>) -> (i32, i32) {
    %0 = arith.index_cast %arg1 : i32 to index
    %1 = memref.load %arg3[%0] : memref<8xi32, #tpu.memory_space<smem>>
    %c0_i32 = arith.constant 0 : i32
    return %1, %arg0 : i32, i32
  }
}

</mosaic_0001>

<bundles_post_ra>
// kernel: tpu_custom_call.1
= control target key start
LH: loop header
LB: loop body
LE: loop exit
PB: predicated region body
PF: predicated region fallthrough
CT: control target
= control target key end

     0   :  { %s1718_s0 = inlined_call_operand.hbm [shape: s32[8], index: 0, kind: input, shape index: {}]   ;;  %s1719_s4 = inlined_call_operand.hbm [shape: f32[128,128], index: 4, kind: input, shape index: {}]   ;;  %s1720_s5 = inlined_call_operand.hbm [shape: f32[4,256,128], index: 5, kind: input, shape index: {}]   ;;  %s1721_s6 = inlined_call_operand.hbm [shape: f32[128,256], index: 6, kind: output, shape index: {}]   ;;  %s1722_s1 = inlined_call_operand.vmem [shape: s32[8], index: 1, kind: input, shape index: {}]   ;;  %s1723_s2 = inlined_call_operand.vmem [shape: s32[8], index: 2, kind: input, shape index: {}]   ;;  %s1724_s3 = inlined_call_operand.vmem [shape: s32[8], index: 3, kind: input, shape index: {}]  }
   0x1   :  { %1738 = sst [smem:[#allocation31_spill]] %s1719_s4  ;;  %s937_s23 = scalar_lea.hbm %s1718_s0, 16 }
   0x2   :  { %1739 = sst [smem:[#allocation32_spill]] %s1721_s6  ;;  %p938_p0 = scmp.ne.s32.totalorder %s1718_s0, %s937_s23 }
   0x3   :  { %p941_p1 = scmp.lt.u32.totalorder %s937_s23, %s1718_s0 }
   0x5   :  { %p943_p2 = pnand %p941_p1, %p938_p0 }
   0x7   :  { %946 = shalt.err (!%p943_p2)  }
   0x8   :  { %s1197_s28 = smov [#allocation4]   ;;  %s13_s9 = sshll.u32 %s1722_s1, 4  ;;  %s14_s9 = int_to_ptr.vmem [resolvable:$true] %s13_s9 }
   0x9   :  { %12 = dma.hbm_to_smem %s1718_s0, 16, %s1197_s28, [#allocation3] }
   0xa   :  { %s17_s12 = sshll.u32 %s1723_s2, 4  ;;  %s947_s13 = scalar_lea.vmem %s14_s9, 16  ;;  %s18_s12 = int_to_ptr.vmem [resolvable:$true] %s17_s12 }
   0xb   :  { %p948_p3 = scmp.ne.s32.totalorder %s14_s9, %s947_s13  ;;  %p952_p4 = scmp.lt.s32.totalorder %s14_s9, %s14_s9 }
   0xc   :  { %p953_p5 = scmp.lt.s32.totalorder %s947_s13, %s947_s13 }
   0xe   :  { %p954_p6 = por %p953_p5, %p952_p4 }
  0x10   :  { %p955_p7 = pnand %p954_p6, %p948_p3 }
  0x12   :  { %958 = shalt.err (!%p955_p7)  }
  0x13   :  { %s1198_s14 = smov [#allocation5]   ;;  %s21_s16 = sshll.u32 %s1724_s3, 4  ;;  %s22_s16 = int_to_ptr.vmem [resolvable:$true] %s21_s16 }
  0x14   :  { %16 = dma.vmem_to_smem %s14_s9, 16, %s1198_s14, [#allocation3] }
  0x15   :  { %s959_s1 = scalar_lea.vmem %s18_s12, 16  ;;  %p964_p9 = scmp.lt.s32.totalorder %s18_s12, %s18_s12 }
  0x16   :  { %p960_p8 = scmp.ne.s32.totalorder %s18_s12, %s959_s1  ;;  %p965_p10 = scmp.lt.s32.totalorder %s959_s1, %s959_s1 }
  0x18   :  { %p966_p11 = por %p965_p10, %p964_p9 }
  0x1a   :  { %p967_p12 = pnand %p966_p11, %p960_p8 }
  0x1c   :  { %970 = shalt.err (!%p967_p12)  }
  0x1d   :  { %s1199_s2 = smov [#allocation6]   ;;  %s971_s17 = scalar_lea.vmem %s22_s16, 16 }
  0x1e   :  { %20 = dma.vmem_to_smem %s18_s12, 16, %s1199_s2, [#allocation3] }
  0x1f   :  { %p972_p13 = scmp.ne.s32.totalorder %s22_s16, %s971_s17  ;;  %p976_p0 = scmp.lt.s32.totalorder %s22_s16, %s22_s16 }
  0x20   :  { %p977_p1 = scmp.lt.s32.totalorder %s971_s17, %s971_s17 }
  0x22   :  { %p978_p2 = por %p977_p1, %p976_p0 }
  0x24   :  { %p979_p3 = pnand %p978_p2, %p972_p13 }
  0x26   :  { %982 = shalt.err (!%p979_p3)  }
  0x27   :  { %s1200_s18 = smov [#allocation7]  }
  0x28   :  { %24 = dma.vmem_to_smem %s22_s16, 16, %s1200_s18, [#allocation3] }
  0x29   :  { %1127 = dma.done.wait [#allocation3], 64 }
  0x2a   :  { %1128 = vsyncadd [#allocation3], 4294967232 }
  0x2b   :  { %26 = sfence }
  0x2c   :  { %27 = vsyncpa [#allocation9], 0 }
  0x2d   :  { %29 = vsyncpa [#allocation9 + $0x1], 0 }
  0x2e   :  { %30 = vsyncpa [#allocation12], 0 }
  0x2f   :  { %32 = vsyncpa [#allocation12 + $0x1], 0 }
  0x30   :  { %33 = vsyncpa [#allocation10], 0 }
  0x31   :  { %35 = vsyncpa [#allocation10 + $0x1], 0  ;;  %s1266_s3 = smov 0   ;;  %s1268_s19 = smov 0  }
  0x32   :  { %s1270_s20 = smov 0   ;;  %s1272_s21 = smov 0  }
  0x33   :  { %s1274_s22 = smov 0   ;;  %s1276_s23 = smov 0  }
  0x34   :  { %s1278_s24 = smov 0   ;;  %s1280_s25 = smov 0  }
  0x35   :  { %s1282_s26 = smov 0   ;;  %s1284_s27 = smov 0  }
  0x36   :  { %s1286_s28 = smov 0   ;;  %s1288_s29 = smov 0  }
  0x37   :  { %s1290_s30 = smov 0   ;;  %s1292_s7 = smov 0  }
  0x38 LB: > { %1740 = sst [smem:[#allocation23_spill]] %s1175_s26  ;;  %s56_s8 = sadd.s32 1, %s1187_s29  ;;  %s1195_s7 = sphi %s1292_s7, %s41_s7   ;;  %s1191_s30 = sphi %s1290_s30, %s1796_s30   ;;  %s1187_s29 = sphi %s1288_s29, %s1784_s29   ;;  %s1183_s28 = sphi %s1286_s28, %s1795_s28   ;;  %s1179_s27 = sphi %s1284_s27, %s1783_s27   ;;  %s1175_s26 = sphi %s1282_s26, %s1782_s26   ;;  %s1171_s25 = sphi %s1280_s25, %s1794_s25   ;;  %s1167_s24 = sphi %s1278_s24, %s1793_s24   ;;  %s1163_s23 = sphi %s1276_s23, %s1792_s23   ;;  %s1159_s22 = sphi %s1274_s22, %s1791_s22   ;;  %s1155_s21 = sphi %s1272_s21, %s1790_s21   ;;  %s1151_s20 = sphi %s1270_s20, %s1789_s20   ;;  %s1147_s19 = sphi %s1268_s19, %s1788_s19   ;;  %s1143_s3 = sphi %s1266_s3, %s1787_s3  }
  0x39   : > { %1741 = sst [smem:[#allocation24_spill]] %s1179_s27  ;;  %s652_s9 = sadd.s32 4294967295, %s1195_s7  }
  0x3a   : > { %1742 = sst [smem:[#allocation25_spill]] %s1183_s28  ;;  %p1336_p4 = scmp.ge.s32.totalorder %s56_s8, 8 }
  0x3b   : > { %1743 = sst [smem:[#allocation26_spill]] %s1187_s29  ;;  %p86_p5 = scmp.ne.s32.totalorder %s1175_s26, %s1171_s25 }
  0x3c   : > { %s64_s11 = sld [smem:[#allocation4 + %s1187_s29]]  ;;  %s1798_s8 = smov (%p1336_p4, %s56_s8), 0 }
  0x3d   : > { %1745 = sst [smem:[#allocation27_spill]] %s1798_s8  ;;  %p1728_p6 = scmp.eq.s32.totalorder %s1195_s7, 0 }
  0x3e   : > { %p92_p7 = scmp.ne.s32.totalorder %s1171_s25, %s1167_s24  ;;  %s69_s12 = sld [smem:[#allocation4 + %s1798_s8]] }
  0x3f   : > { %p1350_p8 = scmp.eq.s32.totalorder %s652_s9, 0  ;;  %s79_s14 = sadd.s32 1, %s1175_s26 }
  0x40   : > { %p1357_p9 = por %p1728_p6, %p86_p5  ;;  %p1367_p11 = scmp.eq.s32.totalorder %s652_s9, 15 }
  0x41   : > { %s1746_s13 = scalar_select %p1350_p8, 1, 0 }
  0x42   : > { %p1363_p10 = por %p1350_p8, %p92_p7  ;;  %s186_s1 = sand.u32 1, %s1175_s26  }
  0x43   : > { %s1749_s16 = scalar_select %p1367_p11, 1, 0 }
  0x44   : > { %s1748_s15 = scalar_select %p1363_p10, 1, 0 }
  0x45   : > { %p1727_p12 = scmp.lt.s32.totalorder %s1195_s7, 16  ;;  %s656_s2 = sshll.u32 %s186_s1, 5 }
  0x46   : > { %s74_s17 = ssub.s32 %s64_s11, %s69_s12  ;;  %s190_s24 = scalar_lea.vmem [#allocation8], %s656_s2 }
  0x47   : > { %p1377_p13 = pnand %p1727_p12, %p1357_p9  ;;  %p77_p0 = scmp.eq.s32.totalorder %s74_s17, 0 }
  0x48   : > { %s203_s6 = sshll.u32 %s190_s24, 4  ;;  %p663_p1 = scmp.ge.s32.totalorder %s1195_s7, 1  ;;  %s1393_s6 = int_to_ptr.vmem [resolvable:$true] %s203_s6 }
  0x49   : > { %s786_s9 = scalar_select %p1357_p9, [#allocation4], [#allocation14] }
  0x4a   : > { %s1384_s28 = scalar_select %p77_p0, %s1175_s26, %s79_s14  }
  0x4b   : > { %s787_s27 = scalar_select %p1357_p9, %s1187_s29, 0 }
  0x4c   : > { %1751 = sst [smem:[#allocation28_spill]] %s1384_s28  ;;  %s1800_s9 = smov (!%p1727_p12, %s786_s9), [#allocation17] }
  0x4d   : > { %s1802_s27 = smov (!%p1727_p12, %s787_s27), 0  ;;  %p240_p2 = scmp.lt.s32.totalorder %s1195_s7, 17 }
  0x4e   : > { %s191_s11 = sld [smem:[%s1800_s9 + %s1802_s27]]  ;;  %s1406_s0 = scalar_lea.sflag [#allocation9], %s186_s1 }
  0x4f   : > { %p1397_p3 = pnand %p663_p1, %p240_p2  ;;  %s1753_s4 = sld [smem:[#allocation31_spill]] }
  0x50   : > { %p985_p7 = pneg %p1377_p13 }
  0x51   : > { %s1752_s12 = scalar_select %p1397_p3, 1, 0 }
  0x54   : > { %s678_s2 = sshll.u32 %s191_s11, 9 }
  0x55   : > { %s1404_s14 = scalar_lea.hbm %s1753_s4, %s678_s2  ;;  %s988_s11 = scalar_lea.hbm %s1753_s4, 2048 }
  0x56   : > { %s983_s28 = scalar_lea.hbm %s1404_s14, 512  ;;  %p989_p1 = scmp.lt.u32.totalorder %s1404_s14, %s1753_s4 }
  0x57   : > { %p984_p5 = scmp.ne.s32.totalorder %s1404_s14, %s983_s28  ;;  %p990_p2 = scmp.lt.u32.totalorder %s988_s11, %s983_s28 }
  0x58   : > { %p992_p6 = scmp.lt.u32.totalorder %s983_s28, %s1404_s14 }
  0x59   : > { %p986_p9 = pnand %p985_p7, %p984_p5  ;;  %p991_p12 = por %p990_p2, %p989_p1 }
  0x5b   : > { %p987_p0 = pneg %p986_p9  ;;  %p993_p10 = por %p992_p6, %p991_p12 }
  0x5d   : > { %p994_p3 = pnand %p993_p10, %p987_p0 }
  0x5f   : > { %997 = shalt.err (!%p994_p3)
}
  0x60   : > { %s998_s1 = scalar_lea.vmem %s1393_s6, 512  ;;  %s1201_s24 = smov [#allocation8]  }
  0x61   : > { %p999_p5 = scmp.ne.s32.totalorder %s1393_s6, %s998_s1  ;;  %s1003_s27 = sshll.u32 %s1201_s24, 4  ;;  %s1004_s27 = int_to_ptr.vmem [resolvable:$false] %s1003_s27 }
  0x62   : > { %s1005_s9 = scalar_lea.vmem %s1004_s27, 1024  ;;  %p1006_p8 = scmp.lt.s32.totalorder %s1393_s6, %s1004_s27 }
  0x63   : > { %p1001_p9 = pnand %p999_p5, %p985_p7  ;;  %p1007_p1 = scmp.lt.s32.totalorder %s1005_s9, %s998_s1 }
  0x65   : > { %p1002_p11 = pneg %p1001_p9  ;;  %p1008_p2 = por %p1007_p1, %p1006_p8 }
  0x67   : > { %p1009_p6 = pnand %p1008_p2, %p1002_p11 }
  0x69   : > { %1012 = shalt.err (!%p1009_p6)
}
  0x6a   : > { %s1731_s28 = smov 128   ;;  %s1732_s11 = smov 8  }
  0x6b   : > { %803 = dma.hbm_to_vmem [thread:$0]  (!%p1377_p13), %s1404_s14, 512, %s1393_s6, %s1406_s0, %s1731_s28, %s1731_s28, %s1732_s11  }
  0x6c   : > { %s60_s2 = sadd.s32 1, %s1191_s30  ;;  %s102_s17 = sld [smem:[#allocation5 + %s1187_s29]] }
  0x6d   : > { %s1804_s2 = smov (!%p1336_p4, %s60_s2), %s1191_s30  ;;  %s653_s1 = sadd.s32 4294967294, %s1195_s7  }
  0x6e   : > { %s107_s24 = sld [smem:[#allocation5 + %s1798_s8]]  ;;  %p62_p8 = scmp.ge.s32.totalorder %s1804_s2, 2 }
  0x6f   : > { %p126_p10 = scmp.ne.s32.totalorder %s1163_s23, %s1159_s22  ;;  %p132_p11 = scmp.ne.s32.totalorder %s1159_s22, %s1155_s21 }
  0x70   : > { %s142_s18 = sld [smem:[#allocation4 + %s1187_s29]]  ;;  %s1806_s2 = smov (%p62_p8, %s1804_s2), 0 }
  0x71   : > { %1754 = sst [smem:[#allocation29_spill]] %s1806_s2  ;;  %s119_s6 = sadd.s32 1, %s1163_s23 }
  0x72   : > { %p1755_p12 = scmp.ne.s32.totalorder %s1746_s13, 0  ;;  %s113_s14 = ssub.s32 %s1191_s30, %s1806_s2 }
  0x73   : > { %s143_s0 = sld [smem:[#allocation4 + %s1798_s8]]  ;;  %p1757_p4 = scmp.eq.s32.totalorder %s1195_s7, 0 }
  0x74   : > { %p1454_p13 = por %p132_p11, %p1755_p12  ;;  %s112_s27 = ssub.s32 %s102_s17, %s107_s24 }
  0x75   : > { %p1463_p3 = por %p126_p10, %p1757_p4  ;;  %s114_s21 = sor.u32 %s113_s14, %s112_s27 }
  0x76   : > { %p159_p7 = scmp.ne.s32.totalorder %s1151_s20, %s1147_s19  ;;  %p117_p0 = scmp.eq.s32.totalorder %s114_s21, 0 }
  0x77   : > { %p165_p5 = scmp.ne.s32.totalorder %s1147_s19, %s1143_s3  ;;  %p1759_p9 = scmp.ne.s32.totalorder %s1749_s16, 0 }
  0x78   : > { %p166_p2 = scmp.eq.s32.totalorder %s653_s1, 15  ;;  %s149_s11 = sadd.s32 1, %s1151_s20 }
  0x79   : > { %p1473_p1 = por %p1759_p9, %p159_p7  ;;  %s144_s24 = ssub.s32 %s142_s18, %s143_s0 }
  0x7a   : > { %s1478_s17 = scalar_select %p117_p0, %s1163_s23, %s119_s6  }
  0x7b   : > { %s1760_s13 = scalar_select %p1473_p1, 1, 0 }
  0x7c   : > { %1761 = sst [smem:[#allocation30_spill]] %s1478_s17  ;;  %p1480_p6 = por %p166_p2, %p165_p5 }
  0x7d   : > { %s146_s28 = sor.u32 %s144_s24, %s113_s14  ;;  %s213_s21 = sand.u32 1, %s1163_s23  }
  0x7e   : > { %s1762_s27 = scalar_select %p1480_p6, 1, 0 }
  0x7f   : > { %p147_p8 = scmp.eq.s32.totalorder %s146_s28, 0  ;;  %s659_s16 = sshll.u32 %s213_s21, 7 }
  0x80   : > { %p1763_p10 = scmp.lt.s32.totalorder %s1195_s7, 16  ;;  %s217_s6 = scalar_lea.vmem [#allocation11], %s659_s16 }
  0x81   : > { %s1487_s4 = scalar_select %p147_p8, %s1151_s20, %s149_s11  }
  0x82   : > { %p1493_p11 = pnand %p1763_p10, %p1463_p3  ;;  %p1765_p12 = pmov %p1763_p10 }
  0x83   : > { %s789_s1 = scalar_select %p1463_p3, [#allocation5], [#allocation15] }
  0x84   : > { %s790_s18 = scalar_select %p1463_p3, %s1187_s29, 0 }
  0x85   : > { %s1808_s1 = smov (!%p1765_p12, %s789_s1), [#allocation18]  ;;  %p1766_p4 = pmov %p1763_p10 }
  0x86   : > { %s660_s11 = sshll.u32 %s1191_s30, 4  ;;  %s232_s14 = sshll.u32 %s217_s6, 4  ;;  %s1507_s14 = int_to_ptr.vmem [resolvable:$true] %s232_s14 }
  0x87   : > { %s1810_s18 = smov (!%p1766_p4, %s790_s18), 0  ;;  %s1514_s29 = scalar_lea.sflag [#allocation12], %s213_s21 }
  0x88   : > { %s218_s28 = sld [smem:[%s1808_s1 + %s1810_s18]]  ;;  %p1015_p7 = pneg %p1493_p11 }
  0x89   : > { %s1018_s26 = scalar_lea.hbm %s1720_s5, 16384 }
  0x8e   : > { %s661_s0 = sshll.u32 %s218_s28, 5 }
  0x8f   : > { %s229_s24 = sadd.s32 %s661_s0, %s660_s11 }
  0x90   : > { %s662_s8 = sshll.u32 %s229_s24, 7 }
  0x91   : > { %s1512_s9 = scalar_lea.hbm %s1720_s5, %s662_s8 }
  0x92   : > { %s1013_s1 = scalar_lea.hbm %s1512_s9, 2048  ;;  %p1019_p9 = scmp.lt.u32.totalorder %s1512_s9, %s1720_s5 }
  0x93   : > { %p1014_p3 = scmp.ne.s32.totalorder %s1512_s9, %s1013_s1  ;;  %p1020_p2 = scmp.lt.u32.totalorder %s1018_s26, %s1013_s1 }
  0x94   : > { %p1022_p10 = scmp.lt.u32.totalorder %s1013_s1, %s1512_s9 }
  0x95   : > { %p1016_p0 = pnand %p1015_p7, %p1014_p3  ;;  %p1021_p8 = por %p1020_p2, %p1019_p9 }
  0x97   : > { %p1017_p5 = pneg %p1016_p0  ;;  %p1023_p12 = por %p1022_p10, %p1021_p8 }
  0x99   : > { %p1024_p4 = pnand %p1023_p12, %p1017_p5 }
  0x9b   : > { %1027 = shalt.err (!%p1024_p4)
}
  0x9c   : > { %s1028_s21 = scalar_lea.vmem %s1507_s14, 2048  ;;  %s1204_s28 = smov [#allocation11]  }
  0x9d   : > { %p1029_p3 = scmp.ne.s32.totalorder %s1507_s14, %s1028_s21  ;;  %s1033_s11 = sshll.u32 %s1204_s28, 4  ;;  %s1034_s11 = int_to_ptr.vmem [resolvable:$false] %s1033_s11 }
  0x9e   : > { %s1035_s6 = scalar_lea.vmem %s1034_s11, 4096  ;;  %p1036_p1 = scmp.lt.s32.totalorder %s1507_s14, %s1034_s11 }
  0x9f   : > { %p1031_p0 = pnand %p1029_p3, %p1015_p7  ;;  %p1037_p9 = scmp.lt.s32.totalorder %s1035_s6, %s1028_s21 }
  0xa1   : > { %p1032_p6 = pneg %p1031_p0  ;;  %p1038_p2 = por %p1037_p9, %p1036_p1 }
  0xa3   : > { %p1039_p8 = pnand %p1038_p2, %p1032_p6 }
  0xa5   : > { %1042 = shalt.err (!%p1039_p8)
}
  0xa6   : > { %s1767_s0 = smov 8   ;;  %s1768_s24 = smov 128  }
  0xa7   : > { %808 = dma.hbm_to_vmem [thread:$0]  (!%p1493_p11), %s1512_s9, 2048, %s1507_s14, %s1514_s29, %s1768_s24, %s1768_s24, %s1767_s0  }
  0xa8   : > { %p1769_p7 = scmp.ne.s32.totalorder %s1752_s12, 0 }
  0xa9   : > { %s246_s1 = sand.u32 (!%p1769_p7), 1, %s1171_s25   ;;  %p1770_p1 = scmp.ne.s32.totalorder (!%p1769_p7), %s1748_s15, 0 }
  0xaa   : > { %244 = sbr.rel (%p1769_p7) target bundleno = 549 (0x225), region = 28  ;;  %s664_s16 = sshll.u32 (!%p1769_p7), %s246_s1, 5 }
  0xab   : > { %s247_s18 = scalar_lea.sflag (!%p1769_p7), [#allocation9], %s246_s1  ;;  %s1548_s26 = scalar_lea.vmem (!%p1769_p7), [#allocation8], %s664_s16 }
  0xb1   : > { %1130 = dma.done.wait (%p1770_p1), %s247_s18, 512  }
  0xb2   : > { %1132 = vsyncadd (%p1770_p1), %s247_s18, 4294966784  ;;  %s255_s2 = sand.u32 1, %s1159_s22  }
  0xb3   : > { %s665_s8 = sshll.u32 %s255_s2, 7  ;;  %s256_s29 = scalar_lea.sflag [#allocation12], %s255_s2 }
  0xb4   : > { %s1555_s14 = scalar_lea.vmem [#allocation11], %s665_s8 }
  0xb5   : > { %1134 = dma.done.wait (%p1454_p13), %s256_s29, 2048  }
  0xb6   : > { %1136 = vsyncadd (%p1454_p13), %s256_s29, 4294965248  ;;  %s1771_s12 = sld [smem:[#allocation24_spill]]  ;;  %s282_s6 = sand.u32 1, %s1147_s19  }
  0xb7   : > { %s666_s0 = sshll.u32 %s282_s6, 5 }
  0xb8   : > { %s1583_s1 = scalar_lea.vmem [#allocation13], %s666_s0 }
  0xbc   : > { %s667_s15 = sadd.s32 4294967295, %s1771_s12  ;;  %s306_s9 = sadd.s32 1, %s1771_s12 }
  0xbd   : > { %s1564_s17 = sld [smem:[#allocation6 + %s1771_s12]]  ;;  %p303_p6 = scmp.gt.s32.totalorder %s667_s15, 0 }
  0xbe   : > { %s1567_s21 = sld [smem:[#allocation7 + %s1771_s12]]  ;;  %p307_p13 = scmp.lt.s32.totalorder %s306_s9, 7 }
  0xbf   : > { %s1570_s28 = sld [smem:[#allocation4 + %s1771_s12]]  ;;  %s1812_s15 = smov (!%p303_p6, %s667_s15), 0 }
  0xc0   : > { %s1814_s9 = smov (!%p307_p13, %s306_s9), 7  ;;  %s305_s10 = sld [smem:[#allocation4 + %s1812_s15]] }
  0xc1   : > { %s309_s11 = sld [smem:[#allocation4 + %s1814_s9]]  ;;  %p310_p11 = scmp.eq.s32.totalorder %s1771_s12, 0 }
  0xc2   : > { %p313_p5 = scmp.eq.s32.totalorder %s1771_s12, 7 }
  0xc6   : > { %p311_p10 = scmp.ne.s32.totalorder %s305_s10, %s1570_s28 }
  0xc7   : > { %p314_p12 = scmp.ne.s32.totalorder %s309_s11, %s1570_s28 }
  0xc8   : > { %p312_p4 = por %p311_p10, %p310_p11 }
  0xc9   : > { %p1579_p3 = por %p314_p12, %p313_p5  ;;  %v1205_v0 = vmov (%p312_p4), 0.0  }
  0xca   : > { %320 = sbr.rel (!%p312_p4) target bundleno = 209 (0xd1), region = 40  ;;  %321 = vst [vmem:[#allocation2] sm:$0xff] (%p312_p4), %v1205_v0  ;;  %322 = vst [vmem:[#allocation2 + $0x8] sm:$0xff] (%p312_p4), %v1205_v0 }
  0xcb   : > { %323 = vst [vmem:[#allocation2 + $0x10] sm:$0xff] (%p312_p4), %v1205_v0  ;;  %324 = vst [vmem:[#allocation2 + $0x18] sm:$0xff] (%p312_p4), %v1205_v0 }
  0xd1 PF: > { %p669_p0 = scmp.le.s32.totalorder %s1567_s21, %s1564_s17 }
  0xd2   : > { %v333_v1 = vld [vmem:[%s1555_s14] sm:$0xff] (!%p669_p0)  ;;  %v334_v2 = vld [vmem:[%s1555_s14 + $0x8] sm:$0xff] (!%p669_p0)  ;;  %v335_v3 = vld [vmem:[%s1555_s14 + $0x10] sm:$0xff] (!%p669_p0)  ;;  %s670_s16 = sshll.u32 (!%p669_p0), %s1570_s28, 5 }
  0xd3   : > { %328 = sbr.rel (%p669_p0) target bundleno = 509 (0x1fd), region = 44  ;;  %v738_v4 = vpack.c.bf16 (!%p669_p0), %v334_v2, %v333_v1  ;;  %v336_v5 = vld [vmem:[%s1555_s14 + $0x18] sm:$0xff] (!%p669_p0)  ;;  %v329_v7 = vld [vmem:[%s1548_s26] sm:$0xff] (!%p669_p0)  ;;  %v331_v8 = vld [vmem:[%s1548_s26 + $0x10] sm:$0xff] (!%p669_p0)  ;;  %s436_s18 = sadd.s32 (!%p669_p0), 32, %s670_s16 }
  0xd4   : > { %v742_v6 = vpack.c.bf16 (!%p669_p0), %v336_v5, %v335_v3  ;;  %v337_v9 = vld [vmem:[%s1555_s14 + $0x20] sm:$0xff] (!%p669_p0)  ;;  %v338_v10 = vld [vmem:[%s1555_s14 + $0x28] sm:$0xff] (!%p669_p0)  ;;  %732 = vmatprep.mubr.f32.mxu0 (!%p669_p0), %v329_v7  ;;  %735 = vmatprep.mubr.f32.mxu1 (!%p669_p0), %v331_v8  ;;  %v339_v12 = vld [vmem:[%s1555_s14 + $0x30] sm:$0xff] (!%p669_p0)  ;;  %p435_p9 = scmp.le.s32.totalorder (!%p669_p0), %s1564_s17, %s670_s16  ;;  %p437_p2 = scmp.ge.s32.totalorder (!%p669_p0), %s1567_s21, %s436_s18 }
  0xd5   : > { %739 = vmatprep.subr.bf16.mxu0 (!%p669_p0), %v738_v4  ;;  %770 = vmatprep.subr.bf16.mxu1 (!%p669_p0), %v738_v4  ;;  %v746_v11 = vpack.c.bf16 (!%p669_p0), %v338_v10, %v337_v9  ;;  %v340_v13 = vld [vmem:[%s1555_s14 + $0x38] sm:$0xff] (!%p669_p0)  ;;  %v341_v15 = vld [vmem:[%s1555_s14 + $0x40] sm:$0xff] (!%p669_p0)  ;;  %v342_v16 = vld [vmem:[%s1555_s14 + $0x48] sm:$0xff] (!%p669_p0) }
  0xd6   : > { %741 = vmatpush3.bf16.xpose.msra.mxu0 (!%p669_p0), %v738_v4  ;;  %778 = vmatpush3.bf16.xpose.msra.mxu1 (!%p669_p0), %v738_v4  ;;  %v750_v14 = vpack.c.bf16 (!%p669_p0), %v340_v13, %v339_v12  ;;  %v754_v17 = vpack.c.bf16 (!%p669_p0), %v342_v16, %v341_v15  ;;  %v343_v18 = vld [vmem:[%s1555_s14 + $0x50] sm:$0xff] (!%p669_p0)  ;;  %v344_v19 = vld [vmem:[%s1555_s14 + $0x58] sm:$0xff] (!%p669_p0)  ;;  %v345_v21 = vld [vmem:[%s1555_s14 + $0x60] sm:$0xff] (!%p669_p0)  ;;  %p1610_p8 = pnand (!%p669_p0), %p437_p2, %p435_p9 }
  0xd7   : > { %743 = vmatprep.subr.bf16.mxu0 (!%p669_p0), %v742_v6  ;;  %771 = vmatprep.subr.bf16.mxu1 (!%p669_p0), %v742_v6  ;;  %v758_v20 = vpack.c.bf16 (!%p669_p0), %v344_v19, %v343_v18  ;;  %v346_v22 = vld [vmem:[%s1555_s14 + $0x68] sm:$0xff] (!%p669_p0)  ;;  %v347_v24 = vld [vmem:[%s1555_s14 + $0x70] sm:$0xff] (!%p669_p0)  ;;  %v348_v25 = vld [vmem:[%s1555_s14 + $0x78] sm:$0xff] (!%p669_p0) }
  0xd8   : > { %v762_v23 = vpack.c.bf16 (!%p669_p0), %v346_v22, %v345_v21  ;;  %v766_v26 = vpack.c.bf16 (!%p669_p0), %v348_v25, %v347_v24  ;;  %v330_v27 = vld [vmem:[%s1548_s26 + $0x8] sm:$0xff] (!%p669_p0)  ;;  %v332_v28 = vld [vmem:[%s1548_s26 + $0x18] sm:$0xff] (!%p669_p0) }
  0xda   : > { %v442_v33 = vld [vmem:[#allocation2] sm:$0xff] (!%p1610_p8)  ;;  %v443_v34 = vld [vmem:[#allocation2 + $0x8] sm:$0xff] (!%p1610_p8)  ;;  %v444_v35 = vld [vmem:[#allocation2 + $0x10] sm:$0xff] (!%p1610_p8) }
  0xdb   : > { %v445_v39 = vld [vmem:[#allocation2 + $0x18] sm:$0xff] (!%p1610_p8) }
  0xde   : > { %745 = vmatpush3.bf16.xpose.msra.mxu0 %v742_v6  ;;  %779 = vmatpush3.bf16.xpose.msra.mxu1 %v742_v6 }
  0xdf   : > { %747 = vmatprep.subr.bf16.mxu0 %v746_v11  ;;  %772 = vmatprep.subr.bf16.mxu1 %v746_v11 }
  0xe6   : > { %749 = vmatpush3.bf16.xpose.msra.mxu0 %v746_v11  ;;  %780 = vmatpush3.bf16.xpose.msra.mxu1 %v746_v11 }
  0xe7   : > { %751 = vmatprep.subr.bf16.mxu0 %v750_v14  ;;  %773 = vmatprep.subr.bf16.mxu1 %v750_v14 }
  0xee   : > { %753 = vmatpush3.bf16.xpose.msra.mxu0 %v750_v14  ;;  %781 = vmatpush3.bf16.xpose.msra.mxu1 %v750_v14 }
  0xef   : > { %755 = vmatprep.subr.bf16.mxu0 %v754_v17  ;;  %774 = vmatprep.subr.bf16.mxu1 %v754_v17 }
  0xf6   : > { %757 = vmatpush3.bf16.xpose.msra.mxu0 %v754_v17  ;;  %782 = vmatpush3.bf16.xpose.msra.mxu1 %v754_v17 }
  0xf7   : > { %759 = vmatprep.subr.bf16.mxu0 %v758_v20  ;;  %775 = vmatprep.subr.bf16.mxu1 %v758_v20 }
  0xfe   : > { %761 = vmatpush3.bf16.xpose.msra.mxu0 %v758_v20  ;;  %783 = vmatpush3.bf16.xpose.msra.mxu1 %v758_v20 }
  0xff   : > { %763 = vmatprep.subr.bf16.mxu0 %v762_v23  ;;  %776 = vmatprep.subr.bf16.mxu1 %v762_v23 }
 0x106   : > { %765 = vmatpush3.bf16.xpose.msra.mxu0 %v762_v23  ;;  %784 = vmatpush3.bf16.xpose.msra.mxu1 %v762_v23 }
 0x107   : > { %767 = vmatprep.subr.bf16.mxu0 %v766_v26  ;;  %777 = vmatprep.subr.bf16.mxu1 %v766_v26 }
 0x10e   : > { %769 = vmatpush3.bf16.xpose.msra.mxu0 %v766_v26  ;;  %785 = vmatpush3.bf16.xpose.msra.mxu1 %v766_v26 }
 0x115   : > { %733 = vmatmul.mubr.f32.vlgmr.msra.gmra.mrb[0].mxu0 %v330_v27  ;;  %736 = vmatmul.mubr.f32.vlgmr.msra.gmra.mrb[0].mxu1 %v332_v28 }
 0x1e3   : > { %441 = sbr.rel (%p1610_p8) target bundleno = 493 (0x1ed), region = 48 }
 0x1e8   : > { %v734_v29 = vpop.f32.mrb[0].mxu0  ;;  %v737_v30 = vpop.f32.mrb[0].mxu1 }
 0x1e9   : > { %v415_v31 = vpop.f32.mrb[1].mxu0  ;;  %v425_v32 = vpop.f32.mrb[1].mxu1  ;;  %v447_v37 = vadd.f32 (!%p1610_p8), %v734_v29, %v443_v34  ;;  %v449_v40 = vadd.f32 (!%p1610_p8), %v737_v30, %v445_v39 }
 0x1ea   : > { %v446_v36 = vadd.f32 %v442_v33, %v415_v31  ;;  %v448_v38 = vadd.f32 %v444_v35, %v425_v32 }
 0x1eb   : > { %451 = vst [vmem:[#allocation2 + $0x8] sm:$0xff] %v447_v37  ;;  %453 = vst [vmem:[#allocation2 + $0x18] sm:$0xff] %v449_v40 }
 0x1ec   : > { %450 = vst [vmem:[#allocation2] sm:$0xff] %v446_v36  ;;  %452 = vst [vmem:[#allocation2 + $0x10] sm:$0xff] %v448_v38 }
 0x1ed PF: > { %456 = sbr.rel (!%p1610_p8) target bundleno = 509 (0x1fd), region = 52  ;;  %v457_v41 = vlaneseq (%p1610_p8)  ;;  %v462_v42 = vstv (%p1610_p8), %s670_s16  ;;  %v467_v44 = vstv (%p1610_p8), %s1564_s17  ;;  %v472_v45 = vstv (%p1610_p8), %s1567_s21 }
 0x1ef   : > { %v458_v43 = vshrl.u32 (%p1610_p8), %v457_v41, 7 }
 0x1f1   : > { %v463_v46 = vadd.s32 (%p1610_p8), %v462_v42, %v458_v43  ;;  %v459_v47 = vadd.s32 (%p1610_p8), 8, %v458_v43  ;;  %v460_v48 = vadd.s32 (%p1610_p8), 16, %v458_v43  ;;  %v461_v49 = vadd.s32 (%p1610_p8), 24, %v458_v43 }
 0x1f2   : > { %v482_v55 = vld [vmem:[#allocation2 + $0x8] sm:$0xff] (%p1610_p8)  ;;  %v484_v59 = vld [vmem:[#allocation2 + $0x18] sm:$0xff] (%p1610_p8) }
 0x1f3   : > { %vm468_vm0 = vcmp.ge.s32.totalorder (%p1610_p8), %v463_v46, %v467_v44  ;;  %vm473_vm1 = vcmp.lt.s32.totalorder (%p1610_p8), %v463_v46, %v472_v45  ;;  %v481_v50 = vld [vmem:[#allocation2] sm:$0xff] (%p1610_p8)  ;;  %v464_v51 = vadd.s32 (%p1610_p8), %v462_v42, %v459_v47  ;;  %v465_v52 = vadd.s32 (%p1610_p8), %v462_v42, %v460_v48  ;;  %v483_v57 = vld [vmem:[#allocation2 + $0x10] sm:$0xff] (%p1610_p8) }
 0x1f4   : > { %vm477_vm2 = vmand %vm468_vm0, %vm473_vm1  ;;  %v466_v53 = vadd.s32 %v462_v42, %v461_v49 }
 0x1f5   : > { %v493_v54 = vsel %vm477_vm2, %v415_v31, 0.0  ;;  %vm469_vm3 = vcmp.ge.s32.totalorder %v464_v51, %v467_v44  ;;  %vm474_vm4 = vcmp.lt.s32.totalorder %v464_v51, %v472_v45  ;;  %vm470_vm5 = vcmp.ge.s32.totalorder %v465_v52, %v467_v44 }
 0x1f6   : > { %v497_v56 = vadd.f32 %v493_v54, %v481_v50  ;;  %vm478_vm6 = vmand %vm469_vm3, %vm474_vm4  ;;  %vm475_vm7 = vcmp.lt.s32.totalorder %v465_v52, %v472_v45  ;;  %vm471_vm8 = vcmp.ge.s32.totalorder %v466_v53, %v467_v44  ;;  %vm476_vm9 = vcmp.lt.s32.totalorder %v466_v53, %v472_v45 }
 0x1f7   : > { %v494_v58 = vsel %vm478_vm6, %v734_v29, 0.0  ;;  %vm479_vm10 = vmand %vm470_vm5, %vm475_vm7 }
 0x1f8   : > { %501 = vst [vmem:[#allocation2] sm:$0xff] %v497_v56  ;;  %v498_v60 = vadd.f32 %v494_v58, %v482_v55  ;;  %v495_v61 = vsel %vm479_vm10, %v425_v32, 0.0  ;;  %vm480_vm11 = vmand %vm471_vm8, %vm476_vm9 }
 0x1f9   : > { %v499_v62 = vadd.f32 %v495_v61, %v483_v57  ;;  %v496_v63 = vsel %vm480_vm11, %v737_v30, 0.0 }
 0x1fa   : > { %502 = vst [vmem:[#allocation2 + $0x8] sm:$0xff] %v498_v60  ;;  %v500_v0 = vadd.f32 %v496_v63, %v484_v59 }
 0x1fb   : > { %503 = vst [vmem:[#allocation2 + $0x10] sm:$0xff] %v499_v62 }
 0x1fc   : > { %504 = vst [vmem:[#allocation2 + $0x18] sm:$0xff] %v500_v0 }
 0x1fd PF: > { %508 = sbr.rel (!%p1579_p3) target bundleno = 517 (0x205), region = 56 }
 0x1ff   : > { %v509_v1 = vld [vmem:[#allocation2] sm:$0xff] (%p1579_p3) }
 0x200   : > { %513 = vst [vmem:[%s1583_s1] sm:$0xff] (%p1579_p3), %v509_v1 }
 0x201   : > { %v510_v2 = vld [vmem:[#allocation2 + $0x8] sm:$0xff] (%p1579_p3) }
 0x202   : > { %v511_v3 = vld [vmem:[#allocation2 + $0x10] sm:$0xff] (%p1579_p3)  ;;  %514 = vst [vmem:[%s1583_s1 + $0x8] sm:$0xff] (%p1579_p3), %v510_v2 }
 0x203   : > { %515 = vst [vmem:[%s1583_s1 + $0x10] sm:$0xff] (%p1579_p3), %v511_v3  ;;  %v512_v4 = vld [vmem:[#allocation2 + $0x18] sm:$0xff] (%p1579_p3) }
 0x204   : > { %516 = vst [vmem:[%s1583_s1 + $0x18] sm:$0xff] %v512_v4 }
 0x205 PF: > { %p1774_p7 = scmp.ne.s32.totalorder %s1760_s13, 0  ;;  %s1775_s26 = sld [smem:[#allocation24_spill]] }
 0x206   : > { %s1776_s8 = sld [smem:[#allocation25_spill]]  ;;  %s534_s12 = sshll.u32 %s1583_s1, 4  ;;  %s1632_s12 = int_to_ptr.vmem [resolvable:$true] %s534_s12 }
 0x207   : > { %s794_s29 = scalar_select %p1774_p7, [#allocation4], [#allocation16] }
 0x208   : > { %s1777_s10 = sld [smem:[#allocation32_spill]]  ;;  %s1642_s0 = scalar_lea.sflag [#allocation10], %s282_s6 }
 0x209   : > { %s1043_s24 = scalar_lea.vmem %s1632_s12, 512  ;;  %s1206_s1 = smov [#allocation13]  }
 0x20a   : > { %p1044_p1 = scmp.ne.s32.totalorder %s1632_s12, %s1043_s24  ;;  %s1047_s16 = sshll.u32 %s1206_s1, 4  ;;  %s1048_s16 = int_to_ptr.vmem [resolvable:$false] %s1047_s16 }
 0x20b   : > { %s1816_s26 = smov (!%p1774_p7, %s1775_s26), 0  ;;  %s1049_s18 = scalar_lea.vmem %s1048_s16, 1024 }
 0x20c   : > { %s525_s14 = sld [smem:[%s794_s29 + %s1816_s26]]  ;;  %p1045_p6 = pnand %p1044_p1, %p1774_p7 }
 0x20d   : > { %p1050_p11 = scmp.lt.s32.totalorder %s1632_s12, %s1048_s16  ;;  %p1051_p5 = scmp.lt.s32.totalorder %s1049_s18, %s1043_s24 }
 0x20e   : > { %p1046_p13 = pneg %p1045_p6 }
 0x20f   : > { %p1052_p10 = por %p1051_p5, %p1050_p11 }
 0x211   : > { %p1053_p12 = pnand %p1052_p10, %p1046_p13 }
 0x212   : > { %s679_s15 = sshll.u32 %s525_s14, 3 }
 0x213   : > { %s531_s9 = sadd.s32 %s1776_s8, %s679_s15 }
 0x214   : > { %s675_s17 = sshll.u32 %s531_s9, 7 }
 0x215   : > { %s1638_s11 = scalar_lea.hbm %s1777_s10, %s675_s17 }
 0x216   : > { %1056 = shalt.err (!%p1053_p12)
}
 0x217   : > { %s1057_s6 = scalar_lea.hbm %s1638_s11, 512  ;;  %s1061_s8 = scalar_lea.hbm %s1777_s10, 4096 }
 0x218   : > { %p1058_p4 = scmp.ne.s32.totalorder %s1638_s11, %s1057_s6  ;;  %p1062_p9 = scmp.lt.u32.totalorder %s1638_s11, %s1777_s10 }
 0x219   : > { %p1063_p2 = scmp.lt.u32.totalorder %s1061_s8, %s1057_s6  ;;  %p1065_p1 = scmp.lt.u32.totalorder %s1057_s6, %s1638_s11 }
 0x21a   : > { %p1059_p3 = pnand %p1058_p4, %p1774_p7 }
 0x21b   : > { %p1064_p8 = por %p1063_p2, %p1062_p9 }
 0x21c   : > { %p1060_p0 = pneg %p1059_p3 }
 0x21d   : > { %p1066_p6 = por %p1065_p1, %p1064_p8 }
 0x21f   : > { %p1067_p13 = pnand %p1066_p6, %p1060_p0 }
 0x221   : > { %1070 = shalt.err (!%p1067_p13)
}
 0x222   : > { %s1207_s15 = smov 128   ;;  %s1208_s9 = smov 256  }
 0x223   : > { %s1209_s17 = smov 8  }
 0x224   : > { %796 = dma.vmem_to_hbm [thread:$0]  (%p1774_p7), %s1632_s12, 512, %s1638_s11, %s1642_s0, %s1207_s15, %s1208_s9, %s1209_s17  }
 0x225 PF: > { %p814_p11 = scmp.ge.s32.totalorder %s1195_s7, 2  ;;  %s549_s21 = sand.u32 1, %s1143_s3  }
 0x226   : > { %p1778_p5 = scmp.ne.s32.totalorder %s1762_s27, 0  ;;  %s550_s28 = scalar_lea.sflag [#allocation10], %s549_s21 }
 0x228   : > { %p810_p10 = pnand %p814_p11, %p1778_p5 }
 0x22a   : > { %1138 = dma.done.wait (!%p810_p10), %s550_s28, 512  }
 0x22b   : > { %1140 = vsyncadd (!%p810_p10), %s550_s28, 4294966784  ;;  %s41_s7 = sadd.s32 1, %s1195_s7   ;;  %s1780_s13 = sld [smem:[#allocation30_spill]] }
 0x22c   : > { %p1671_p12 = scmp.ge.s32.totalorder %s41_s7, 18   ;;  %s1781_s12 = sld [smem:[#allocation23_spill]] }
 0x22d   : > { %s1782_s26 = sld [smem:[#allocation28_spill]]  ;;  %s1783_s27 = sld [smem:[#allocation26_spill]] }
 0x22e   : > { %s1784_s29 = sld [smem:[#allocation27_spill]]  ;;  %s1785_s11 = sld [smem:[#allocation29_spill]] }
 0x22f   : > { %s1787_s3 = smov %s1147_s19  ;;  %s1788_s19 = smov %s1151_s20 }
 0x230   : > { %s1789_s20 = smov %s1487_s4  ;;  %s1790_s21 = smov %s1159_s22 }
 0x231   : > { %s1791_s22 = smov %s1163_s23  ;;  %s1792_s23 = smov %s1780_s13 }
 0x232   : > { %s1793_s24 = smov %s1171_s25  ;;  %s1794_s25 = smov %s1781_s12 }
 0x233   : > { %s1795_s28 = smov %s1191_s30  ;;  %40 = sbr.rel (!%p1671_p12) target bundleno = 56 (0x38), region = 106 }
 0x234   : > { %s1796_s30 = smov %s1785_s11 }
 0x23a   :  { %555 = vsyncpa [#allocation9], 1 }
 0x23b   :  { %557 = vsyncpa [#allocation9 + $0x1], 1 }
 0x23c   :  { %558 = vsyncpa [#allocation12], 1 }
 0x23d   :  { %560 = vsyncpa [#allocation12 + $0x1], 1 }
 0x23e   :  { %561 = vsyncpa [#allocation10], 1 }
 0x23f   :  { %563 = vsyncpa [#allocation10 + $0x1], 1 }

</bundles_post_ra>
